<compile_context>
chip_gen: v7x
topology: tpu7x:2x2x1
jax: 0.10.0
libtpu: 0.0.40
codegen_flags: <defaults>
</compile_context>

<pallas_src>
import math
from math import ceil

import numpy as np
import jax
import jax.numpy as jnp
from jax import lax
from jax.experimental import pallas as pl
from jax.experimental.pallas import tpu as pltpu


def _round_up(x, m):
    return (x + m - 1) // m * m


# ----------------------------------------------------------------------------
# Deterministic basis construction (pure numpy, mirrors the PyTorch code)
# ----------------------------------------------------------------------------
def basis_discrete(sizeP):
    return int(sizeP // 2 * 2 + 1)


def mask_c_continue(sizeP):
    sizePdis = basis_discrete(sizeP)
    p = (sizePdis - 1) / 2
    x = np.arange(-p, p + 1) / p / sizeP * sizePdis
    X, Y = np.meshgrid(x, x)
    C = X ** 2 + Y ** 2
    Mask = np.exp(-np.maximum(C - 1, 0) / 0.2)
    return X, Y, Mask


def get_basis_continue_change(sizeP, tranNum=8, inP=None):
    sizePdis = basis_discrete(sizeP)
    if inP is None:
        inP = sizePdis
    inX, inY, Mask = mask_c_continue(sizeP)
    X0 = inX[:, :, None]
    Y0 = inY[:, :, None]
    Mask = Mask[:, :, None]
    theta = (np.arange(tranNum) / tranNum * 2 * np.pi)[None, None, :]
    X = np.cos(theta) * X0 - np.sin(theta) * Y0
    Y = np.cos(theta) * Y0 + np.sin(theta) * X0
    X = X[..., None, None]
    Y = Y[..., None, None]
    v = np.pi / inP * (inP - 1)
    p = inP / 2
    k = np.reshape(np.arange(inP), [1, 1, 1, inP, 1])
    l = np.reshape(np.arange(ceil(inP / 2)), [1, 1, 1, 1, ceil(inP / 2)])
    phase = (k - inP * (k > p)) * v * X + (l - inP * (l > p)) * v * Y
    BasisC = np.cos(phase)
    BasisS = np.sin(phase)
    BasisC = (np.reshape(BasisC, [sizePdis, sizePdis, tranNum, inP * ceil(inP / 2)])
              * Mask[..., None] / sizeP ** 2)
    BasisS = (np.reshape(BasisS, [sizePdis, sizePdis, tranNum, inP * ceil(inP / 2)])
              * Mask[..., None] / sizeP ** 2)
    return BasisC.astype(np.float32), BasisS.astype(np.float32)


# ----------------------------------------------------------------------------
# Filter construction glue (plain JAX; exactly mirrors RSFconv.forward)
# ----------------------------------------------------------------------------
def build_filters(weights, basis_list, cfg):
    # weights: [outNum, inNum*scaleExpand, rotExpand, K]
    M, N, A, _ = weights.shape
    O = cfg["rotNum"]
    SE = cfg["scaleExpand"]
    RE = cfg["rotExpand"]
    inNum = cfg["inNum"]
    filters = []
    for s, basis in enumerate(basis_list):
        P = basis.shape[0]
        # einsum('ijok,mnak->monaij')
        tmp = jnp.einsum("ijok,mnak->monaij", basis, weights)  # [M,O,N,A,P,P]
        # rotation "group conv" cyclic index shuffle along the rotExpand axis
        cols = []
        for o in range(O):
            perm = (np.arange(RE) - o) % RE  # identity when RE == 1
            cols.append(tmp[:, o][:, :, perm])
        tmp = jnp.stack(cols, axis=1)  # [M,O,N,A,P,P]
        if SE != 1:
            tmp = tmp.reshape(M, O, SE, inNum, RE, P, P)
            tmp = jnp.transpose(tmp, (0, 1, 3, 2, 4, 5, 6))  # [M,O,inNum,SE,RE,P,P]
            sperm = (np.arange(SE) - s) % SE
            tmp = tmp[:, :, :, sperm]
            filt = tmp.reshape(M * O, inNum * SE * RE, P, P)
        else:
            filt = tmp.reshape(M * O, N * RE, P, P)
        filters.append(filt)
    return filters


# ----------------------------------------------------------------------------
# Pallas fused conv2d kernel (stride=1, groups=1, "same" padding via explicit
# pad).  Lane-dense layout: spatial on lanes, channels-first output.
# ----------------------------------------------------------------------------
def make_conv_kernel(P, Wp, Cin, n_pad):
    # flat-spatial offsets of each tap in the padded image
    offs = [kh * Wp + kw for kh in range(P) for kw in range(P)]

    def kernel(x_ref, w_ref, b_ref, o_ref, col_ref):
        # x_ref:   (1, Cin, L)        bf16  channels-first, flattened padded image
        # w_ref:   (Cout, P*P*Cin)    bf16  contraction ordered as (kh, kw, ci)
        # b_ref:   (Cout, 1)          f32
        # o_ref:   (1, Cout, n_pad)   f32   lane-dense spatial output
        # col_ref: (P*P*Cin, n_pad)   bf16  VMEM im2col scratch
        for t, off in enumerate(offs):
            col_ref[t * Cin:(t + 1) * Cin, :] = x_ref[0, :, pl.ds(off, n_pad)]
        acc = jnp.dot(w_ref[...], col_ref[...],
                      preferred_element_type=jnp.float32)
        o_ref[0] = (acc + b_ref[...]).astype(o_ref.dtype)

    return kernel


def conv2d_fused_pallas(x_nchw, filt_oihw, bias_vec, padding):
    # TODO(synk): stride > 1 and groups > 1 (module defaults used here) not implemented.
    # TODO(synk): for production-sized H*W, tile the spatial (lane) dim via an extra
    #             grid axis instead of one whole image per grid step.
    B, Cin, H, W = x_nchw.shape
    Cout, Cin2, P, _ = filt_oihw.shape
    assert Cin == Cin2
    p = padding
    Hp, Wp = H + 2 * p, W + 2 * p
    Ntot = Hp * Wp
    n_pad = _round_up(Ntot, 128)              # lane-dense / unmasked stores
    max_off = (P - 1) * (Wp + 1)              # largest tap offset
    L = _round_up(max_off + n_pad, 128)       # flat length incl. shift tail
    K = P * P * Cin

    # channels-first flattening of the zero-padded image (no NHWC transpose needed)
    x_pad = jnp.pad(x_nchw, ((0, 0), (0, 0), (p, p), (p, p)))
    x_flat = x_pad.reshape(B, Cin, Ntot)
    x_flat = jnp.pad(x_flat, ((0, 0), (0, 0), (0, L - Ntot))).astype(jnp.bfloat16)

    # OIHW -> [Cout, (kh, kw, ci)] to match the in-kernel im2col row order
    w_mat = jnp.transpose(filt_oihw, (0, 2, 3, 1)).reshape(Cout, K).astype(jnp.bfloat16)
    b_mat = bias_vec.reshape(Cout, 1).astype(jnp.float32)

    kernel = make_conv_kernel(P, Wp, Cin, n_pad)
    out = pl.pallas_call(
        kernel,
        out_shape=jax.ShapeDtypeStruct((B, Cout, n_pad), jnp.float32),
        grid_spec=pltpu.PrefetchScalarGridSpec(
            num_scalar_prefetch=0,
            grid=(B,),
            in_specs=[
                pl.BlockSpec((1, Cin, L), lambda b: (b, 0, 0)),
                pl.BlockSpec((Cout, K), lambda b: (0, 0)),
                pl.BlockSpec((Cout, 1), lambda b: (0, 0)),
            ],
            out_specs=pl.BlockSpec((1, Cout, n_pad), lambda b: (b, 0, 0)),
            scratch_shapes=[pltpu.VMEM((K, n_pad), jnp.bfloat16)],
        ),
        compiler_params=pltpu.CompilerParams(dimension_semantics=("parallel",)),
    )(x_flat, w_mat, b_mat)

    # crop lane padding, un-flatten, crop the spatial padding; already NCHW.
    out = out[:, :, :Ntot].reshape(B, Cout, Hp, Wp)[:, :, :H, :W]
    return out


# ----------------------------------------------------------------------------
# RSFconv forward (all scales fused into one pallas_call)
# ----------------------------------------------------------------------------
def rsf_conv_forward(x, weights, basis_list, c_bias, cfg):
    filters = build_filters(weights, basis_list, cfg)
    P_max = max(cfg["disScaleList"])
    pad_max = (P_max - 1) // 2

    # Zero-embed each scale's PxP filter (centered) into P_max x P_max and stack
    # along Cout.  With padding = pad_max this is numerically identical to the
    # per-scale "same" convs, and the channel order matches the original
    # torch.cat over scales.
    embedded = []
    for filt in filters:
        Ps = filt.shape[-1]
        e = (P_max - Ps) // 2
        embedded.append(jnp.pad(filt, ((0, 0), (0, 0), (e, e), (e, e))))
    filt_all = jnp.concatenate(embedded, axis=0)          # [scaleNum*outNum*rotNum, Cin, P, P]

    bias_scale = jnp.repeat(c_bias.reshape(cfg["outNum"]), cfg["rotNum"])
    bias_all = jnp.tile(bias_scale, cfg["scaleNum"])       # same bias per scale block

    return conv2d_fused_pallas(x, filt_all, bias_all, pad_max)


# ----------------------------------------------------------------------------
if __name__ == "__main__":
    # Module config: RSFconv(inNum=2, outNum=2, rotNum=4, scaleList=[3,5], ifIni=0, bias=True)
    inNum, outNum, rotNum = 2, 2, 4
    scaleList = [3, 5]
    ifIni = 0
    inP = ceil(scaleList[-1])  # 5
    RE = 1 if ifIni else rotNum
    SE = 1 if ifIni else len(scaleList)
    disScaleList = [basis_discrete(s) for s in scaleList]
    paddingList = [(d - 1) // 2 for d in disScaleList]
    K = 2 * inP * ceil(inP / 2)  # 30

    cfg = dict(
        inNum=inNum, outNum=outNum, rotNum=rotNum, rotExpand=RE, scaleExpand=SE,
        scaleNum=len(scaleList), disScaleList=disScaleList, paddingList=paddingList,
    )

    key = jax.random.PRNGKey(0)
    kw, kx = jax.random.split(key)
    # Deterministic synthetic weight init (PyTorch init uses PIL resize of random
    # 3x3 patches; replaced by a deterministic normal init of the same shape).
    weights = jax.random.normal(kw, (outNum, inNum * SE, RE, K), jnp.float32) * (
        1.0 / math.sqrt(inNum * inP * inP)
    )
    # bias parameter c (PyTorch inits to zeros; nonzero deterministic values here
    # to exercise the bias path — same forward semantics).
    c_bias = (0.1 * jnp.arange(outNum, dtype=jnp.float32)).reshape(1, outNum, 1, 1)

    basis_list = []
    for sP in scaleList:
        BC, BS = get_basis_continue_change(sP, rotNum, inP)
        basis_list.append(jnp.asarray(np.concatenate([BC, BS], axis=3), jnp.float32))

    B, H, W = 2, 16, 16
    Cin_total = inNum * RE * SE  # 16
    x = jax.random.normal(kx, (B, Cin_total, H, W), jnp.float32)

    fwd = jax.jit(lambda xx, ww, cc: rsf_conv_forward(xx, ww, basis_list, cc, cfg))
    out = jax.block_until_ready(fwd(x, weights, c_bias))

    # Sanity check against XLA's per-scale conv (same filter glue).  The kernel
    # feeds the MXU bf16 inputs with f32 accumulation, so the reference uses the
    # same bf16-rounded x/filters to keep the comparison tight.
    filters = build_filters(weights, basis_list, cfg)
    bias_vec = jnp.repeat(c_bias.reshape(outNum), rotNum)
    x_bf = x.astype(jnp.bfloat16).astype(jnp.float32)
    refs = []
    for s in range(len(scaleList)):
        p = paddingList[s]
        f_bf = filters[s].astype(jnp.bfloat16).astype(jnp.float32)
        r = lax.conv_general_dilated(
            x_bf, f_bf, (1, 1), [(p, p), (p, p)],
            dimension_numbers=("NCHW", "OIHW", "NCHW"),
        )
        refs.append(r + bias_vec[None, :, None, None])
    ref = jnp.concatenate(refs, axis=1)

    assert out.shape == (B, len(scaleList) * outNum * rotNum, H, W)
    np.testing.assert_allclose(np.asarray(out), np.asarray(ref), rtol=1e-2, atol=1e-2)
    print("KERNEL_OK")
</pallas_src>

<mosaic_0001>
module attributes {stable_mosaic.version = 11 : i64} {
  func.func @kernel(%arg0: i32, %arg1: memref<1x16x640xbf16, #tpu.memory_space<vmem>>, %arg2: memref<16x400xbf16, #tpu.memory_space<vmem>>, %arg3: memref<16x1xf32, #tpu.memory_space<vmem>>, %arg4: memref<1x16x512xf32, #tpu.memory_space<vmem>>, %arg5: memref<400x512xbf16, #tpu.memory_space<vmem>>) attributes {dimension_semantics = [#tpu.dimension_semantics<parallel>], iteration_bounds = array<i64: 2>, scalar_prefetch = 0 : i64, scratch_operands = 1 : i64, tpu.core_type = #tpu.core_type<tc>, window_params = [{transform_indices = @transform_0, window_bounds = array<i64: 1, 16, 640>}, {pipeline_mode = #tpu.pipeline_mode<synchronous>, transform_indices = @transform_1, window_bounds = array<i64: 16, 400>}, {pipeline_mode = #tpu.pipeline_mode<synchronous>, transform_indices = @transform_2, window_bounds = array<i64: 16, 1>}, {transform_indices = @transform_3, window_bounds = array<i64: 1, 16, 512>}]} {
    %c0 = arith.constant 0 : index
    %c0_0 = arith.constant 0 : index
    %c0_1 = arith.constant 0 : index
    %0 = vector.load %arg1[%c0, %c0_0, %c0_1] : memref<1x16x640xbf16, #tpu.memory_space<vmem>>, vector<1x16x512xbf16>
    %1 = vector.shape_cast %0 : vector<1x16x512xbf16> to vector<16x512xbf16>
    %c0_2 = arith.constant 0 : index
    %c0_3 = arith.constant 0 : index
    %2 = vector.load %arg5[%c0_2, %c0_3] : memref<400x512xbf16, #tpu.memory_space<vmem>>, vector<16x512xbf16>
    tpu.vector_store %arg5[%c0_2, %c0_3], %1 {strides = array<i32>} : memref<400x512xbf16, #tpu.memory_space<vmem>>, vector<16x512xbf16>,
    %c0_4 = arith.constant 0 : index
    %c0_5 = arith.constant 0 : index
    %c1 = arith.constant 1 : index
    %3 = vector.load %arg1[%c0_4, %c0_5, %c1] : memref<1x16x640xbf16, #tpu.memory_space<vmem>>, vector<1x16x512xbf16>
    %4 = vector.shape_cast %3 : vector<1x16x512xbf16> to vector<16x512xbf16>
    %c16 = arith.constant 16 : index
    %c0_6 = arith.constant 0 : index
    %5 = vector.load %arg5[%c16, %c0_6] : memref<400x512xbf16, #tpu.memory_space<vmem>>, vector<16x512xbf16>
    tpu.vector_store %arg5[%c16, %c0_6], %4 {strides = array<i32>} : memref<400x512xbf16, #tpu.memory_space<vmem>>, vector<16x512xbf16>,
    %c0_7 = arith.constant 0 : index
    %c0_8 = arith.constant 0 : index
    %c2 = arith.constant 2 : index
    %6 = vector.load %arg1[%c0_7, %c0_8, %c2] : memref<1x16x640xbf16, #tpu.memory_space<vmem>>, vector<1x16x512xbf16>
    %7 = vector.shape_cast %6 : vector<1x16x512xbf16> to vector<16x512xbf16>
    %c32 = arith.constant 32 : index
    %c0_9 = arith.constant 0 : index
    %8 = vector.load %arg5[%c32, %c0_9] : memref<400x512xbf16, #tpu.memory_space<vmem>>, vector<16x512xbf16>
    tpu.vector_store %arg5[%c32, %c0_9], %7 {strides = array<i32>} : memref<400x512xbf16, #tpu.memory_space<vmem>>, vector<16x512xbf16>,
    %c0_10 = arith.constant 0 : index
    %c0_11 = arith.constant 0 : index
    %c3 = arith.constant 3 : index
    %9 = vector.load %arg1[%c0_10, %c0_11, %c3] : memref<1x16x640xbf16, #tpu.memory_space<vmem>>, vector<1x16x512xbf16>
    %10 = vector.shape_cast %9 : vector<1x16x512xbf16> to vector<16x512xbf16>
    %c48 = arith.constant 48 : index
    %c0_12 = arith.constant 0 : index
    %11 = vector.load %arg5[%c48, %c0_12] : memref<400x512xbf16, #tpu.memory_space<vmem>>, vector<16x512xbf16>
    tpu.vector_store %arg5[%c48, %c0_12], %10 {strides = array<i32>} : memref<400x512xbf16, #tpu.memory_space<vmem>>, vector<16x512xbf16>,
    %c0_13 = arith.constant 0 : index
    %c0_14 = arith.constant 0 : index
    %c4 = arith.constant 4 : index
    %12 = vector.load %arg1[%c0_13, %c0_14, %c4] : memref<1x16x640xbf16, #tpu.memory_space<vmem>>, vector<1x16x512xbf16>
    %13 = vector.shape_cast %12 : vector<1x16x512xbf16> to vector<16x512xbf16>
    %c64 = arith.constant 64 : index
    %c0_15 = arith.constant 0 : index
    %14 = vector.load %arg5[%c64, %c0_15] : memref<400x512xbf16, #tpu.memory_space<vmem>>, vector<16x512xbf16>
    tpu.vector_store %arg5[%c64, %c0_15], %13 {strides = array<i32>} : memref<400x512xbf16, #tpu.memory_space<vmem>>, vector<16x512xbf16>,
    %c0_16 = arith.constant 0 : index
    %c0_17 = arith.constant 0 : index
    %c20 = arith.constant 20 : index
    %15 = vector.load %arg1[%c0_16, %c0_17, %c20] : memref<1x16x640xbf16, #tpu.memory_space<vmem>>, vector<1x16x512xbf16>
    %16 = vector.shape_cast %15 : vector<1x16x512xbf16> to vector<16x512xbf16>
    %c80 = arith.constant 80 : index
    %c0_18 = arith.constant 0 : index
    %17 = vector.load %arg5[%c80, %c0_18] : memref<400x512xbf16, #tpu.memory_space<vmem>>, vector<16x512xbf16>
    tpu.vector_store %arg5[%c80, %c0_18], %16 {strides = array<i32>} : memref<400x512xbf16, #tpu.memory_space<vmem>>, vector<16x512xbf16>,
    %c0_19 = arith.constant 0 : index
    %c0_20 = arith.constant 0 : index
    %c21 = arith.constant 21 : index
    %18 = vector.load %arg1[%c0_19, %c0_20, %c21] : memref<1x16x640xbf16, #tpu.memory_space<vmem>>, vector<1x16x512xbf16>
    %19 = vector.shape_cast %18 : vector<1x16x512xbf16> to vector<16x512xbf16>
    %c96 = arith.constant 96 : index
    %c0_21 = arith.constant 0 : index
    %20 = vector.load %arg5[%c96, %c0_21] : memref<400x512xbf16, #tpu.memory_space<vmem>>, vector<16x512xbf16>
    tpu.vector_store %arg5[%c96, %c0_21], %19 {strides = array<i32>} : memref<400x512xbf16, #tpu.memory_space<vmem>>, vector<16x512xbf16>,
    %c0_22 = arith.constant 0 : index
    %c0_23 = arith.constant 0 : index
    %c22 = arith.constant 22 : index
    %21 = vector.load %arg1[%c0_22, %c0_23, %c22] : memref<1x16x640xbf16, #tpu.memory_space<vmem>>, vector<1x16x512xbf16>
    %22 = vector.shape_cast %21 : vector<1x16x512xbf16> to vector<16x512xbf16>
    %c112 = arith.constant 112 : index
    %c0_24 = arith.constant 0 : index
    %23 = vector.load %arg5[%c112, %c0_24] : memref<400x512xbf16, #tpu.memory_space<vmem>>, vector<16x512xbf16>
    tpu.vector_store %arg5[%c112, %c0_24], %22 {strides = array<i32>} : memref<400x512xbf16, #tpu.memory_space<vmem>>, vector<16x512xbf16>,
    %c0_25 = arith.constant 0 : index
    %c0_26 = arith.constant 0 : index
    %c23 = arith.constant 23 : index
    %24 = vector.load %arg1[%c0_25, %c0_26, %c23] : memref<1x16x640xbf16, #tpu.memory_space<vmem>>, vector<1x16x512xbf16>
    %25 = vector.shape_cast %24 : vector<1x16x512xbf16> to vector<16x512xbf16>
    %c128 = arith.constant 128 : index
    %c0_27 = arith.constant 0 : index
    %26 = vector.load %arg5[%c128, %c0_27] : memref<400x512xbf16, #tpu.memory_space<vmem>>, vector<16x512xbf16>
    tpu.vector_store %arg5[%c128, %c0_27], %25 {strides = array<i32>} : memref<400x512xbf16, #tpu.memory_space<vmem>>, vector<16x512xbf16>,
    %c0_28 = arith.constant 0 : index
    %c0_29 = arith.constant 0 : index
    %c24 = arith.constant 24 : index
    %27 = vector.load %arg1[%c0_28, %c0_29, %c24] : memref<1x16x640xbf16, #tpu.memory_space<vmem>>, vector<1x16x512xbf16>
    %28 = vector.shape_cast %27 : vector<1x16x512xbf16> to vector<16x512xbf16>
    %c144 = arith.constant 144 : index
    %c0_30 = arith.constant 0 : index
    %29 = vector.load %arg5[%c144, %c0_30] : memref<400x512xbf16, #tpu.memory_space<vmem>>, vector<16x512xbf16>
    tpu.vector_store %arg5[%c144, %c0_30], %28 {strides = array<i32>} : memref<400x512xbf16, #tpu.memory_space<vmem>>, vector<16x512xbf16>,
    %c0_31 = arith.constant 0 : index
    %c0_32 = arith.constant 0 : index
    %c40 = arith.constant 40 : index
    %30 = vector.load %arg1[%c0_31, %c0_32, %c40] : memref<1x16x640xbf16, #tpu.memory_space<vmem>>, vector<1x16x512xbf16>
    %31 = vector.shape_cast %30 : vector<1x16x512xbf16> to vector<16x512xbf16>
    %c160 = arith.constant 160 : index
    %c0_33 = arith.constant 0 : index
    %32 = vector.load %arg5[%c160, %c0_33] : memref<400x512xbf16, #tpu.memory_space<vmem>>, vector<16x512xbf16>
    tpu.vector_store %arg5[%c160, %c0_33], %31 {strides = array<i32>} : memref<400x512xbf16, #tpu.memory_space<vmem>>, vector<16x512xbf16>,
    %c0_34 = arith.constant 0 : index
    %c0_35 = arith.constant 0 : index
    %c41 = arith.constant 41 : index
    %33 = vector.load %arg1[%c0_34, %c0_35, %c41] : memref<1x16x640xbf16, #tpu.memory_space<vmem>>, vector<1x16x512xbf16>
    %34 = vector.shape_cast %33 : vector<1x16x512xbf16> to vector<16x512xbf16>
    %c176 = arith.constant 176 : index
    %c0_36 = arith.constant 0 : index
    %35 = vector.load %arg5[%c176, %c0_36] : memref<400x512xbf16, #tpu.memory_space<vmem>>, vector<16x512xbf16>
    tpu.vector_store %arg5[%c176, %c0_36], %34 {strides = array<i32>} : memref<400x512xbf16, #tpu.memory_space<vmem>>, vector<16x512xbf16>,
    %c0_37 = arith.constant 0 : index
    %c0_38 = arith.constant 0 : index
    %c42 = arith.constant 42 : index
    %36 = vector.load %arg1[%c0_37, %c0_38, %c42] : memref<1x16x640xbf16, #tpu.memory_space<vmem>>, vector<1x16x512xbf16>
    %37 = vector.shape_cast %36 : vector<1x16x512xbf16> to vector<16x512xbf16>
    %c192 = arith.constant 192 : index
    %c0_39 = arith.constant 0 : index
    %38 = vector.load %arg5[%c192, %c0_39] : memref<400x512xbf16, #tpu.memory_space<vmem>>, vector<16x512xbf16>
    tpu.vector_store %arg5[%c192, %c0_39], %37 {strides = array<i32>} : memref<400x512xbf16, #tpu.memory_space<vmem>>, vector<16x512xbf16>,
    %c0_40 = arith.constant 0 : index
    %c0_41 = arith.constant 0 : index
    %c43 = arith.constant 43 : index
    %39 = vector.load %arg1[%c0_40, %c0_41, %c43] : memref<1x16x640xbf16, #tpu.memory_space<vmem>>, vector<1x16x512xbf16>
    %40 = vector.shape_cast %39 : vector<1x16x512xbf16> to vector<16x512xbf16>
    %c208 = arith.constant 208 : index
    %c0_42 = arith.constant 0 : index
    %41 = vector.load %arg5[%c208, %c0_42] : memref<400x512xbf16, #tpu.memory_space<vmem>>, vector<16x512xbf16>
    tpu.vector_store %arg5[%c208, %c0_42], %40 {strides = array<i32>} : memref<400x512xbf16, #tpu.memory_space<vmem>>, vector<16x512xbf16>,
    %c0_43 = arith.constant 0 : index
    %c0_44 = arith.constant 0 : index
    %c44 = arith.constant 44 : index
    %42 = vector.load %arg1[%c0_43, %c0_44, %c44] : memref<1x16x640xbf16, #tpu.memory_space<vmem>>, vector<1x16x512xbf16>
    %43 = vector.shape_cast %42 : vector<1x16x512xbf16> to vector<16x512xbf16>
    %c224 = arith.constant 224 : index
    %c0_45 = arith.constant 0 : index
    %44 = vector.load %arg5[%c224, %c0_45] : memref<400x512xbf16, #tpu.memory_space<vmem>>, vector<16x512xbf16>
    tpu.vector_store %arg5[%c224, %c0_45], %43 {strides = array<i32>} : memref<400x512xbf16, #tpu.memory_space<vmem>>, vector<16x512xbf16>,
    %c0_46 = arith.constant 0 : index
    %c0_47 = arith.constant 0 : index
    %c60 = arith.constant 60 : index
    %45 = vector.load %arg1[%c0_46, %c0_47, %c60] : memref<1x16x640xbf16, #tpu.memory_space<vmem>>, vector<1x16x512xbf16>
    %46 = vector.shape_cast %45 : vector<1x16x512xbf16> to vector<16x512xbf16>
    %c240 = arith.constant 240 : index
    %c0_48 = arith.constant 0 : index
    %47 = vector.load %arg5[%c240, %c0_48] : memref<400x512xbf16, #tpu.memory_space<vmem>>, vector<16x512xbf16>
    tpu.vector_store %arg5[%c240, %c0_48], %46 {strides = array<i32>} : memref<400x512xbf16, #tpu.memory_space<vmem>>, vector<16x512xbf16>,
    %c0_49 = arith.constant 0 : index
    %c0_50 = arith.constant 0 : index
    %c61 = arith.constant 61 : index
    %48 = vector.load %arg1[%c0_49, %c0_50, %c61] : memref<1x16x640xbf16, #tpu.memory_space<vmem>>, vector<1x16x512xbf16>
    %49 = vector.shape_cast %48 : vector<1x16x512xbf16> to vector<16x512xbf16>
    %c256 = arith.constant 256 : index
    %c0_51 = arith.constant 0 : index
    %50 = vector.load %arg5[%c256, %c0_51] : memref<400x512xbf16, #tpu.memory_space<vmem>>, vector<16x512xbf16>
    tpu.vector_store %arg5[%c256, %c0_51], %49 {strides = array<i32>} : memref<400x512xbf16, #tpu.memory_space<vmem>>, vector<16x512xbf16>,
    %c0_52 = arith.constant 0 : index
    %c0_53 = arith.constant 0 : index
    %c62 = arith.constant 62 : index
    %51 = vector.load %arg1[%c0_52, %c0_53, %c62] : memref<1x16x640xbf16, #tpu.memory_space<vmem>>, vector<1x16x512xbf16>
    %52 = vector.shape_cast %51 : vector<1x16x512xbf16> to vector<16x512xbf16>
    %c272 = arith.constant 272 : index
    %c0_54 = arith.constant 0 : index
    %53 = vector.load %arg5[%c272, %c0_54] : memref<400x512xbf16, #tpu.memory_space<vmem>>, vector<16x512xbf16>
    tpu.vector_store %arg5[%c272, %c0_54], %52 {strides = array<i32>} : memref<400x512xbf16, #tpu.memory_space<vmem>>, vector<16x512xbf16>,
    %c0_55 = arith.constant 0 : index
    %c0_56 = arith.constant 0 : index
    %c63 = arith.constant 63 : index
    %54 = vector.load %arg1[%c0_55, %c0_56, %c63] : memref<1x16x640xbf16, #tpu.memory_space<vmem>>, vector<1x16x512xbf16>
    %55 = vector.shape_cast %54 : vector<1x16x512xbf16> to vector<16x512xbf16>
    %c288 = arith.constant 288 : index
    %c0_57 = arith.constant 0 : index
    %56 = vector.load %arg5[%c288, %c0_57] : memref<400x512xbf16, #tpu.memory_space<vmem>>, vector<16x512xbf16>
    tpu.vector_store %arg5[%c288, %c0_57], %55 {strides = array<i32>} : memref<400x512xbf16, #tpu.memory_space<vmem>>, vector<16x512xbf16>,
    %c0_58 = arith.constant 0 : index
    %c0_59 = arith.constant 0 : index
    %c64_60 = arith.constant 64 : index
    %57 = vector.load %arg1[%c0_58, %c0_59, %c64_60] : memref<1x16x640xbf16, #tpu.memory_space<vmem>>, vector<1x16x512xbf16>
    %58 = vector.shape_cast %57 : vector<1x16x512xbf16> to vector<16x512xbf16>
    %c304 = arith.constant 304 : index
    %c0_61 = arith.constant 0 : index
    %59 = vector.load %arg5[%c304, %c0_61] : memref<400x512xbf16, #tpu.memory_space<vmem>>, vector<16x512xbf16>
    tpu.vector_store %arg5[%c304, %c0_61], %58 {strides = array<i32>} : memref<400x512xbf16, #tpu.memory_space<vmem>>, vector<16x512xbf16>,
    %c0_62 = arith.constant 0 : index
    %c0_63 = arith.constant 0 : index
    %c80_64 = arith.constant 80 : index
    %60 = vector.load %arg1[%c0_62, %c0_63, %c80_64] : memref<1x16x640xbf16, #tpu.memory_space<vmem>>, vector<1x16x512xbf16>
    %61 = vector.shape_cast %60 : vector<1x16x512xbf16> to vector<16x512xbf16>
    %c320 = arith.constant 320 : index
    %c0_65 = arith.constant 0 : index
    %62 = vector.load %arg5[%c320, %c0_65] : memref<400x512xbf16, #tpu.memory_space<vmem>>, vector<16x512xbf16>
    tpu.vector_store %arg5[%c320, %c0_65], %61 {strides = array<i32>} : memref<400x512xbf16, #tpu.memory_space<vmem>>, vector<16x512xbf16>,
    %c0_66 = arith.constant 0 : index
    %c0_67 = arith.constant 0 : index
    %c81 = arith.constant 81 : index
    %63 = vector.load %arg1[%c0_66, %c0_67, %c81] : memref<1x16x640xbf16, #tpu.memory_space<vmem>>, vector<1x16x512xbf16>
    %64 = vector.shape_cast %63 : vector<1x16x512xbf16> to vector<16x512xbf16>
    %c336 = arith.constant 336 : index
    %c0_68 = arith.constant 0 : index
    %65 = vector.load %arg5[%c336, %c0_68] : memref<400x512xbf16, #tpu.memory_space<vmem>>, vector<16x512xbf16>
    tpu.vector_store %arg5[%c336, %c0_68], %64 {strides = array<i32>} : memref<400x512xbf16, #tpu.memory_space<vmem>>, vector<16x512xbf16>,
    %c0_69 = arith.constant 0 : index
    %c0_70 = arith.constant 0 : index
    %c82 = arith.constant 82 : index
    %66 = vector.load %arg1[%c0_69, %c0_70, %c82] : memref<1x16x640xbf16, #tpu.memory_space<vmem>>, vector<1x16x512xbf16>
    %67 = vector.shape_cast %66 : vector<1x16x512xbf16> to vector<16x512xbf16>
    %c352 = arith.constant 352 : index
    %c0_71 = arith.constant 0 : index
    %68 = vector.load %arg5[%c352, %c0_71] : memref<400x512xbf16, #tpu.memory_space<vmem>>, vector<16x512xbf16>
    tpu.vector_store %arg5[%c352, %c0_71], %67 {strides = array<i32>} : memref<400x512xbf16, #tpu.memory_space<vmem>>, vector<16x512xbf16>,
    %c0_72 = arith.constant 0 : index
    %c0_73 = arith.constant 0 : index
    %c83 = arith.constant 83 : index
    %69 = vector.load %arg1[%c0_72, %c0_73, %c83] : memref<1x16x640xbf16, #tpu.memory_space<vmem>>, vector<1x16x512xbf16>
    %70 = vector.shape_cast %69 : vector<1x16x512xbf16> to vector<16x512xbf16>
    %c368 = arith.constant 368 : index
    %c0_74 = arith.constant 0 : index
    %71 = vector.load %arg5[%c368, %c0_74] : memref<400x512xbf16, #tpu.memory_space<vmem>>, vector<16x512xbf16>
    tpu.vector_store %arg5[%c368, %c0_74], %70 {strides = array<i32>} : memref<400x512xbf16, #tpu.memory_space<vmem>>, vector<16x512xbf16>,
    %c0_75 = arith.constant 0 : index
    %c0_76 = arith.constant 0 : index
    %c84 = arith.constant 84 : index
    %72 = vector.load %arg1[%c0_75, %c0_76, %c84] : memref<1x16x640xbf16, #tpu.memory_space<vmem>>, vector<1x16x512xbf16>
    %73 = vector.shape_cast %72 : vector<1x16x512xbf16> to vector<16x512xbf16>
    %c384 = arith.constant 384 : index
    %c0_77 = arith.constant 0 : index
    %74 = vector.load %arg5[%c384, %c0_77] : memref<400x512xbf16, #tpu.memory_space<vmem>>, vector<16x512xbf16>
    tpu.vector_store %arg5[%c384, %c0_77], %73 {strides = array<i32>} : memref<400x512xbf16, #tpu.memory_space<vmem>>, vector<16x512xbf16>,
    %c0_78 = arith.constant 0 : index
    %c0_79 = arith.constant 0 : index
    %75 = vector.load %arg2[%c0_78, %c0_79] : memref<16x400xbf16, #tpu.memory_space<vmem>>, vector<16x400xbf16>
    %c0_80 = arith.constant 0 : index
    %c0_81 = arith.constant 0 : index
    %76 = vector.load %arg5[%c0_80, %c0_81] : memref<400x512xbf16, #tpu.memory_space<vmem>>, vector<400x512xbf16>
    %cst = arith.constant dense<0.000000e+00> : vector<16x512xf32>
    %77 = tpu.matmul %75, %76, %cst {dimension_numbers = #tpu.dot_dimension_numbers<[1], [0], [0], [1], [0, 0, 1, 1], [], []>} : vector<16x400xbf16>, vector<400x512xbf16>, vector<16x512xf32> -> vector<16x512xf32>
    %c0_82 = arith.constant 0 : index
    %c0_83 = arith.constant 0 : index
    %78 = vector.load %arg3[%c0_82, %c0_83] : memref<16x1xf32, #tpu.memory_space<vmem>>, vector<16x1xf32>
    %79 = vector.broadcast %78 : vector<16x1xf32> to vector<16x512xf32>
    %80 = arith.addf %77, %79 : vector<16x512xf32>
    %c0_84 = arith.constant 0 : index
    %c0_85 = arith.constant 0 : index
    %c0_86 = arith.constant 0 : index
    %81 = vector.load %arg4[%c0_84, %c0_85, %c0_86] : memref<1x16x512xf32, #tpu.memory_space<vmem>>, vector<1x16x512xf32>
    %82 = vector.shape_cast %81 : vector<1x16x512xf32> to vector<16x512xf32>
    %83 = vector.shape_cast %80 : vector<16x512xf32> to vector<1x16x512xf32>
    tpu.vector_store %arg4[%c0_84, %c0_85, %c0_86], %83 {strides = array<i32>} : memref<1x16x512xf32, #tpu.memory_space<vmem>>, vector<1x16x512xf32>,
    return
  }
  func.func @transform_0(%arg0: i32) -> (i32, i32, i32) {
    %c0_i32 = arith.constant 0 : i32
    %c0_i32_0 = arith.constant 0 : i32
    %c0_i32_1 = arith.constant 0 : i32
    return %arg0, %c0_i32, %c0_i32_0 : i32, i32, i32
  }
  func.func @transform_1(%arg0: i32) -> (i32, i32) {
    %c0_i32 = arith.constant 0 : i32
    %c0_i32_0 = arith.constant 0 : i32
    %c0_i32_1 = arith.constant 0 : i32
    return %c0_i32, %c0_i32_0 : i32, i32
  }
  func.func @transform_2(%arg0: i32) -> (i32, i32) {
    %c0_i32 = arith.constant 0 : i32
    %c0_i32_0 = arith.constant 0 : i32
    %c0_i32_1 = arith.constant 0 : i32
    return %c0_i32, %c0_i32_0 : i32, i32
  }
  func.func @transform_3(%arg0: i32) -> (i32, i32, i32) {
    %c0_i32 = arith.constant 0 : i32
    %c0_i32_0 = arith.constant 0 : i32
    %c0_i32_1 = arith.constant 0 : i32
    return %arg0, %c0_i32, %c0_i32_0 : i32, i32, i32
  }
}

</mosaic_0001>

<bundles_post_ra>
// kernel: tile.5
= control target key start
LH: loop header
LB: loop body
LE: loop exit
PB: predicated region body
PF: predicated region fallthrough
CT: control target
= control target key end

     0   :  { %vm7_vm0 = vcmask 31744   ;;  %vm13_vm1 = vcmask 64544   ;;  %s39_s0 = inlined_call_operand.vmem [shape: f32[2,4], index: 0, kind: input, shape index: {}]   ;;  %s40_s1 = inlined_call_operand.vmem [shape: f32[8], index: 1, kind: output, shape index: {}]  }
   0x1   :  { %v4_v0 = vld [vmem:[%s39_s0] sm:$0x3]  ;;  %s22_s0 = smov 4  }
   0x2   :  { %5 = vst [vmem:[#allocation1] sm:$0x3] %v4_v0 }
   0x9   :  { %v10_v1 = vld [vmem:[#allocation1 + $0x1] sm:$0x1]   ;;  %v6_v2 = vld [vmem:[#allocation1] sm:$0x1]  }
   0xa   :  { %11 = vrot.lane.b32.xlu0 %v10_v1, %s22_s0  ;;  %8 = vst.msk [vmem:[#allocation0] sm:$0x1] %vm7_vm0, %v6_v2  }
  0x7c   :  { %v12_v3 = vpop.permute.xlu0 %11  }
  0x7d   :  { %14 = vst.msk [vmem:[#allocation0] sm:$0x1] %vm13_vm1, %v12_v3  }
  0x84   :  { %v18_v4 = vld [vmem:[#allocation0] sm:$0x1] }
  0x85   :  { %20 = vst [vmem:[%s40_s1] sm:$0x1] %v18_v4 }

// kernel: tile.6
= control target key start
LH: loop header
LB: loop body
LE: loop exit
PB: predicated region body
PF: predicated region fallthrough
CT: control target
= control target key end

     0   :  { %s22_s0 = inlined_call_operand.vmem [shape: f32[8], index: 0, kind: input, shape index: {}]   ;;  %s23_s1 = inlined_call_operand.vmem [shape: f32[2,8], index: 1, kind: output, shape index: {}]  }
   0x1   :  { %v4_v0 = vld [vmem:[%s22_s0] ss:$0 sm:$0xff] }
   0x2   :  { %5 = vst [vmem:[%s23_s1] sm:$0x3] %v4_v0 }

// kernel: tile.0
= control target key start
LH: loop header
LB: loop body
LE: loop exit
PB: predicated region body
PF: predicated region fallthrough
CT: control target
= control target key end

     0   :  { %s66_s8 = smov 125   ;;  %vm7_vm0 = vcmask 7168   ;;  %s67_s11 = smov 126   ;;  %s117_s0 = inlined_call_operand.vmem [shape: f32[2,8], index: 0, kind: input, shape index: {}]   ;;  %s118_s1 = inlined_call_operand.vmem [shape: f32[16,1], index: 1, kind: output, shape index: {}]  }
   0x1   :  { %v4_v0 = vld [vmem:[%s117_s0] sm:$0x3]  ;;  %s65_s0 = smov 127   ;;  %s68_s12 = smov 124  }
   0x2   :  { %5 = vst [vmem:[#allocation0] sm:$0x3] %v4_v0  ;;  %s69_s13 = smov 123   ;;  %s70_s14 = smov 122  }
   0x3   :  { %s71_s15 = smov 121  }
   0x9   :  { %v9_v1 = vld [vmem:[#allocation0] sm:$0x3]  }
   0xa   :  { %v21_v2 = vld [vmem:[#allocation0] sm:$0x3]   ;;  %10 = vrot.lane.b32.xlu0 %v9_v1, %s65_s0 }
   0xb   :  { %22 = vrot.lane.b32.xlu1 %v21_v2, %s66_s8  ;;  %v15_v3 = vld [vmem:[#allocation0] sm:$0x3]  }
   0xc   :  { %v27_v4 = vld [vmem:[#allocation0] sm:$0x3]  }
   0xd   :  { %v6_v5 = vld [vmem:[#allocation0] sm:$0x3]  }
   0xe   :  { %8 = vst.msk [vmem:[%s118_s1] ss:$8 sm:$0x3] %vm7_vm0, %v6_v5   ;;  %16 = vrot.lane.b32.xlu0 %v15_v3, %s67_s11  ;;  %v33_v6 = vld [vmem:[#allocation0] sm:$0x3]  }
   0xf   :  { %28 = vrot.lane.b32.xlu1 %v27_v4, %s68_s12  ;;  %v39_v7 = vld [vmem:[#allocation0] sm:$0x3]  }
  0x10   :  { %v45_v8 = vld [vmem:[#allocation0] sm:$0x3]  }
  0x12   :  { %34 = vrot.lane.b32.xlu0 %v33_v6, %s69_s13 }
  0x13   :  { %40 = vrot.lane.b32.xlu1 %v39_v7, %s70_s14 }
  0x16   :  { %46 = vrot.lane.b32.xlu0 %v45_v8, %s71_s15 }
  0x7c   :  { %v11_v9 = vpop.permute.xlu0 %10  }
  0x7d   :  { %v23_v10 = vpop.permute.xlu1 %22   ;;  %51 = vst.msk [vmem:[%s118_s1 + $0x1] ss:$8 sm:$0x3] %vm7_vm0, %v11_v9  }
  0x7e   :  { %53 = vst.msk [vmem:[%s118_s1 + $0x3] ss:$8 sm:$0x3] %vm7_vm0, %v23_v10  }
  0x80   :  { %v17_v11 = vpop.permute.xlu0 %16  }
  0x81   :  { %v29_v12 = vpop.permute.xlu1 %28   ;;  %52 = vst.msk [vmem:[%s118_s1 + $0x2] ss:$8 sm:$0x3] %vm7_vm0, %v17_v11  }
  0x82   :  { %54 = vst.msk [vmem:[%s118_s1 + $0x4] ss:$8 sm:$0x3] %vm7_vm0, %v29_v12  }
  0x84   :  { %v35_v13 = vpop.permute.xlu0 %34  }
  0x85   :  { %v41_v14 = vpop.permute.xlu1 %40   ;;  %55 = vst.msk [vmem:[%s118_s1 + $0x5] ss:$8 sm:$0x3] %vm7_vm0, %v35_v13  }
  0x86   :  { %56 = vst.msk [vmem:[%s118_s1 + $0x6] ss:$8 sm:$0x3] %vm7_vm0, %v41_v14  }
  0x88   :  { %v47_v15 = vpop.permute.xlu0 %46  }
  0x89   :  { %57 = vst.msk [vmem:[%s118_s1 + $0x7] ss:$8 sm:$0x3] %vm7_vm0, %v47_v15  }

// kernel: _lambda_.1
= control target key start
LH: loop header
LB: loop body
LE: loop exit
PB: predicated region body
PF: predicated region fallthrough
CT: control target
= control target key end

     0   :  { %s2062_s12 = smov 0   ;;  %s2271_s0 = inlined_call_operand.vmem [shape: bf16[2,16,640], index: 0, kind: input, shape index: {}]   ;;  %s2272_s1 = inlined_call_operand.vmem [shape: bf16[16,400], index: 1, kind: input, shape index: {}]   ;;  %s2273_s2 = inlined_call_operand.vmem [shape: f32[16,1], index: 2, kind: input, shape index: {}]   ;;  %s2274_s3 = inlined_call_operand.vmem [shape: f32[2,16,512], index: 3, kind: output, shape index: {}]  }
   0x1 LB: > { %s1774_s13 = sadd.s32 4294967295, %s2015_s12   ;;  %p1778_p0 = scmp.ge.s32.totalorder %s2015_s12, 1  ;;  %s2015_s12 = sphi %s2062_s12, %s13_s12  }
   0x2   : > { %p137_p1 = scmp.lt.s32.totalorder %s2015_s12, 3 }
   0x4   : > { %p138_p2 = pnand %p1778_p0, %p137_p1 }
   0x5   : > { %p161_p3 = scmp.lt.s32.totalorder (!%p138_p2), %s1774_s13, 1  ;;  %s2017_s18 = smov (!%p138_p2), 127   ;;  %vm237_vm0 = vcmask (!%p138_p2), 1039360   ;;  %vm287_vm1 = vcmask (!%p138_p2), 1031168   ;;  %vm337_vm2 = vcmask (!%p138_p2), 1022976   ;;  %vm387_vm3 = vcmask (!%p138_p2), 1014784  }
   0x6   : > { %141 = sbr.rel (%p138_p2) target bundleno = 593 (0x251), region = 32  ;;  %s2018_s19 = smov (!%p138_p2), 126   ;;  %v2005_v45 = vld [vmem:[%s2272_s1 + $0x4] ss:$16 sps:$4 sm:$0xff] (!%p138_p2)   ;;  %vm437_vm4 = vcmask (!%p138_p2), 883712   ;;  %vm487_vm5 = vcmask (!%p138_p2), 875520  }
   0x7   : > { %s2019_s20 = smov (!%p138_p2), 125   ;;  %s2020_s21 = smov (!%p138_p2), 124   ;;  %1571 = vmatprep.mubr.bf16.mxu0 (!%p138_p2), %v2005_v45  ;;  %1657 = vmatprep.mubr.bf16.mxu1 (!%p138_p2), %v2005_v45  ;;  %vm537_vm6 = vcmask (!%p138_p2), 867328   ;;  %vm587_vm7 = vcmask (!%p138_p2), 859136   ;;  %vm637_vm8 = vcmask (!%p138_p2), 850944   ;;  %vm687_vm9 = vcmask (!%p138_p2), 719872  }
   0x8   : > { %s2021_s22 = smov (!%p138_p2), 108   ;;  %s2022_s23 = smov (!%p138_p2), 107   ;;  %vm737_vm10 = vcmask (!%p138_p2), 711680   ;;  %vm787_vm11 = vcmask (!%p138_p2), 703488   ;;  %vm837_vm12 = vcmask (!%p138_p2), 695296   ;;  %vm887_vm13 = vcmask (!%p138_p2), 687104  }
   0x9   : > { %s2023_s24 = smov (!%p138_p2), 106   ;;  %s2024_s25 = smov (!%p138_p2), 105   ;;  %vm937_vm14 = vcmask (!%p138_p2), 556032   ;;  %vm1535_vm15 = vcmask (!%p138_p2), 130048  }
   0xa   : > { %s2025_s26 = smov (!%p138_p2), 104   ;;  %s2026_s27 = smov (!%p138_p2), 88  }
   0xb   : > { %s2027_s28 = smov (!%p138_p2), 87   ;;  %s2028_s29 = smov (!%p138_p2), 86  }
   0xc   : > { %s2029_s30 = smov (!%p138_p2), 85   ;;  %s2030_s4 = smov (!%p138_p2), 84  }
   0xd   : > { %s2276_s13 = smov (!%p161_p3, %s1774_s13), 1  ;;  %s2031_s5 = smov 68  }
   0xe   : > { %s1931_s14 = smul.u32 40, %s2276_s13  ;;  %s2032_s8 = smov 67  }
   0xf   : > { %s2033_s9 = smov 66   ;;  %s2034_s10 = smov 65  }
  0x10   : > { %s2076_s17 = scalar_lea.vmem %s2271_s0, %s1931_s14  ;;  %s2035_s11 = smov 64  }
  0x11   : > { %v2079_v0 = vld [vmem:[%s2076_s17 + $0xc] ss:$20 sps:$4 sm:$0xff]   ;;  %v2082_v1 = vld [vmem:[%s2076_s17 + $0x8] ss:$20 sps:$4 sm:$0xff]   ;;  %v2086_v2 = vld [vmem:[%s2076_s17 + $0x4] ss:$20 sps:$4 sm:$0xff]  }
  0x12   : > { %233 = vrot.lane.b32.xlu1 %v2079_v0, %s2017_s18  ;;  %v2089_v3 = vld [vmem:[%s2076_s17] ss:$20 sps:$4 sm:$0xff]   ;;  %1625 = vmatprep.subr.bf16.mxu1 %v2079_v0  ;;  %v1973_v4 = vld [vmem:[%s2076_s17 + $0x10] ss:$20 sps:$4 sm:$0xff]   ;;  %s2036_s14 = smov 48   ;;  %s2037_s15 = smov 47  }
  0x13   : > { %1626 = vmatpush1.bf16.msra.mxu1 %v2082_v1  ;;  %229 = vrot.lane.b32.xlu0 %v2086_v2, %s2017_s18  ;;  %v1974_v5 = vld [vmem:[%s2076_s17 + $0x10] ss:$20 sps:$4 sm:$0xff]   ;;  %s2038_s16 = smov 46  }
  0x14   : > { %1539 = vmatprep.subr.bf16.mxu0 %v2086_v2  ;;  %v1975_v6 = vld [vmem:[%s2076_s17 + $0x10] ss:$20 sps:$4 sm:$0xff]  }
  0x15   : > { %1540 = vmatpush1.bf16.msra.mxu0 %v2089_v3  ;;  %v1976_v7 = vld [vmem:[%s2076_s17 + $0x10] ss:$20 sps:$4 sm:$0xff]  }
  0x16   : > { %235 = vrot.lane.b32.xlu1 %v1973_v4, %s2017_s18  ;;  %v1977_v8 = vld [vmem:[%s2076_s17 + $0x10] ss:$20 sps:$4 sm:$0xff]  }
  0x17   : > { %231 = vrot.lane.b32.xlu0 %v2082_v1, %s2017_s18  ;;  %v1978_v9 = vld [vmem:[%s2076_s17 + $0x10] ss:$20 sps:$4 sm:$0xff]  }
  0x18   : > { %v1979_v10 = vld [vmem:[%s2076_s17 + $0x10] ss:$20 sps:$4 sm:$0xff]  }
  0x19   : > { %v1980_v11 = vld [vmem:[%s2076_s17 + $0x10] ss:$20 sps:$4 sm:$0xff]  }
  0x1a   : > { %279 = vrot.lane.b32.xlu1 %v2086_v2, %s2018_s19  ;;  %v1981_v12 = vld [vmem:[%s2076_s17 + $0x10] ss:$20 sps:$4 sm:$0xff]  }
  0x1b   : > { %227 = vrot.lane.b32.xlu0 %v2089_v3, %s2017_s18  ;;  %v1982_v13 = vld [vmem:[%s2076_s17 + $0x10] ss:$20 sps:$4 sm:$0xff]   ;;  %s2039_s18 = smov 45  }
  0x1c   : > { %v1983_v14 = vld [vmem:[%s2076_s17 + $0x10] ss:$20 sps:$4 sm:$0xff]  }
  0x1d   : > { %v1984_v16 = vld [vmem:[%s2076_s17 + $0x10] ss:$20 sps:$4 sm:$0xff]  }
  0x1e   : > { %283 = vrot.lane.b32.xlu1 %v2079_v0, %s2018_s19  ;;  %v1985_v21 = vld [vmem:[%s2076_s17 + $0x10] ss:$20 sps:$4 sm:$0xff]  }
  0x1f   : > { %281 = vrot.lane.b32.xlu0 %v2082_v1, %s2018_s19  ;;  %v1986_v36 = vld [vmem:[%s2076_s17 + $0x10] ss:$20 sps:$4 sm:$0xff]  }
  0x20   : > { %v1987_v41 = vld [vmem:[%s2076_s17 + $0x10] ss:$20 sps:$4 sm:$0xff]  }
  0x21   : > { %v1988_v57 = vld [vmem:[%s2076_s17 + $0x10] ss:$20 sps:$4 sm:$0xff]  }
  0x22   : > { %277 = vrot.lane.b32.xlu1 %v2089_v3, %s2018_s19  ;;  %v1989_v62 = vld [vmem:[%s2076_s17 + $0x10] ss:$20 sps:$4 sm:$0xff]  }
  0x23   : > { %285 = vrot.lane.b32.xlu0 %v1974_v5, %s2018_s19  ;;  %s2040_s19 = smov 44  }
  0x26   : > { %331 = vrot.lane.b32.xlu1 %v2082_v1, %s2019_s20 }
  0x27   : > { %329 = vrot.lane.b32.xlu0 %v2086_v2, %s2019_s20 }
  0x2a   : > { %335 = vrot.lane.b32.xlu1 %v1975_v6, %s2019_s20 }
  0x2b   : > { %333 = vrot.lane.b32.xlu0 %v2079_v0, %s2019_s20 }
  0x2e   : > { %379 = vrot.lane.b32.xlu1 %v2086_v2, %s2020_s21 }
  0x2f   : > { %327 = vrot.lane.b32.xlu0 %v2089_v3, %s2019_s20 }
  0x32   : > { %383 = vrot.lane.b32.xlu1 %v2079_v0, %s2020_s21 }
  0x33   : > { %381 = vrot.lane.b32.xlu0 %v2082_v1, %s2020_s21 }
  0x36   : > { %377 = vrot.lane.b32.xlu1 %v2089_v3, %s2020_s21 }
  0x37   : > { %385 = vrot.lane.b32.xlu0 %v1976_v7, %s2020_s21 }
  0x3a   : > { %431 = vrot.lane.b32.xlu1 %v2082_v1, %s2021_s22 }
  0x3b   : > { %429 = vrot.lane.b32.xlu0 %v2086_v2, %s2021_s22 }
  0x3e   : > { %435 = vrot.lane.b32.xlu1 %v1977_v8, %s2021_s22 }
  0x3f   : > { %433 = vrot.lane.b32.xlu0 %v2079_v0, %s2021_s22 }
  0x42   : > { %479 = vrot.lane.b32.xlu1 %v2086_v2, %s2022_s23 }
  0x43   : > { %427 = vrot.lane.b32.xlu0 %v2089_v3, %s2021_s22 }
  0x46   : > { %483 = vrot.lane.b32.xlu1 %v2079_v0, %s2022_s23 }
  0x47   : > { %481 = vrot.lane.b32.xlu0 %v2082_v1, %s2022_s23 }
  0x4a   : > { %477 = vrot.lane.b32.xlu1 %v2089_v3, %s2022_s23 }
  0x4b   : > { %485 = vrot.lane.b32.xlu0 %v1978_v9, %s2022_s23 }
  0x4e   : > { %531 = vrot.lane.b32.xlu1 %v2082_v1, %s2023_s24 }
  0x4f   : > { %529 = vrot.lane.b32.xlu0 %v2086_v2, %s2023_s24 }
  0x52   : > { %535 = vrot.lane.b32.xlu1 %v1979_v10, %s2023_s24 }
  0x53   : > { %533 = vrot.lane.b32.xlu0 %v2079_v0, %s2023_s24 }
  0x56   : > { %579 = vrot.lane.b32.xlu1 %v2086_v2, %s2024_s25 }
  0x57   : > { %527 = vrot.lane.b32.xlu0 %v2089_v3, %s2023_s24 }
  0x5a   : > { %583 = vrot.lane.b32.xlu1 %v2079_v0, %s2024_s25 }
  0x5b   : > { %581 = vrot.lane.b32.xlu0 %v2082_v1, %s2024_s25 }
  0x5e   : > { %577 = vrot.lane.b32.xlu1 %v2089_v3, %s2024_s25 }
  0x5f   : > { %585 = vrot.lane.b32.xlu0 %v1980_v11, %s2024_s25 }
  0x62   : > { %631 = vrot.lane.b32.xlu1 %v2082_v1, %s2025_s26 }
  0x63   : > { %629 = vrot.lane.b32.xlu0 %v2086_v2, %s2025_s26 }
  0x66   : > { %635 = vrot.lane.b32.xlu1 %v1981_v12, %s2025_s26 }
  0x67   : > { %633 = vrot.lane.b32.xlu0 %v2079_v0, %s2025_s26 }
  0x6a   : > { %679 = vrot.lane.b32.xlu1 %v2086_v2, %s2026_s27 }
  0x6b   : > { %627 = vrot.lane.b32.xlu0 %v2089_v3, %s2025_s26 }
  0x6e   : > { %683 = vrot.lane.b32.xlu1 %v2079_v0, %s2026_s27 }
  0x6f   : > { %681 = vrot.lane.b32.xlu0 %v2082_v1, %s2026_s27 }
  0x72   : > { %677 = vrot.lane.b32.xlu1 %v2089_v3, %s2026_s27 }
  0x73   : > { %685 = vrot.lane.b32.xlu0 %v1982_v13, %s2026_s27 }
  0x76   : > { %731 = vrot.lane.b32.xlu1 %v2082_v1, %s2027_s28 }
  0x77   : > { %729 = vrot.lane.b32.xlu0 %v2086_v2, %s2027_s28 }
  0x7a   : > { %735 = vrot.lane.b32.xlu1 %v1983_v14, %s2027_s28 }
  0x7b   : > { %733 = vrot.lane.b32.xlu0 %v2079_v0, %s2027_s28 }
  0x7e   : > { %779 = vrot.lane.b32.xlu1 %v2086_v2, %s2028_s29 }
  0x7f   : > { %727 = vrot.lane.b32.xlu0 %v2089_v3, %s2027_s28 }
  0x82   : > { %783 = vrot.lane.b32.xlu1 %v2079_v0, %s2028_s29 }
  0x83   : > { %781 = vrot.lane.b32.xlu0 %v2082_v1, %s2028_s29 }
  0x84   : > { %v234_v15 = vpop.permute.xlu1 %233 }
  0x85   : > { %v230_v17 = vpop.permute.xlu0 %229 }
  0x86   : > { %777 = vrot.lane.b32.xlu1 %v2089_v3, %s2028_s29 }
  0x87   : > { %785 = vrot.lane.b32.xlu0 %v1984_v16, %s2028_s29  ;;  %s1914_s29 = sshll.u32 %s2276_s13, 6 }
  0x88   : > { %v236_v18 = vpop.permute.xlu1 %235 }
  0x89   : > { %v241_v19 = vsel %vm237_vm0, %v234_v15, %v236_v18  ;;  %v232_v20 = vpop.permute.xlu0 %231 }
  0x8a   : > { %831 = vrot.lane.b32.xlu1 %v2082_v1, %s2029_s30  ;;  %1627 = vmatprep.subr.bf16.mxu1 %v241_v19  ;;  %v239_v22 = vsel %vm237_vm0, %v230_v17, %v232_v20  ;;  %v240_v23 = vsel %vm237_vm0, %v232_v20, %v234_v15 }
  0x8b   : > { %829 = vrot.lane.b32.xlu0 %v2086_v2, %s2029_s30  ;;  %1541 = vmatprep.subr.bf16.mxu0 %v239_v22  ;;  %v1991_v22 = vld [vmem:[%s2076_s17 + $0x10] ss:$20 sps:$4 sm:$0xff]  }
  0x8c   : > { %v280_v24 = vpop.permute.xlu1 %279  ;;  %1628 = vmatpush1.bf16.msra.mxu1 %v240_v23 }
  0x8d   : > { %v228_v25 = vpop.permute.xlu0 %227 }
  0x8e   : > { %835 = vrot.lane.b32.xlu1 %v1985_v21, %s2029_s30  ;;  %v238_v26 = vsel %vm237_vm0, %v228_v25, %v230_v17  ;;  %v1990_v17 = vld [vmem:[%s2076_s17 + $0x10] ss:$20 sps:$4 sm:$0xff]   ;;  %vm987_vm0 = vcmask 547840  }
  0x8f   : > { %833 = vrot.lane.b32.xlu0 %v2079_v0, %s2029_s30  ;;  %1542 = vmatpush1.bf16.msra.mxu0 %v238_v26 }
  0x90   : > { %v284_v27 = vpop.permute.xlu1 %283 }
  0x91   : > { %v282_v28 = vpop.permute.xlu0 %281 }
  0x92   : > { %879 = vrot.lane.b32.xlu1 %v2086_v2, %s2030_s4  ;;  %v289_v29 = vsel %vm287_vm1, %v280_v24, %v282_v28  ;;  %v290_v34 = vsel %vm287_vm1, %v282_v28, %v284_v27 }
  0x93   : > { %827 = vrot.lane.b32.xlu0 %v2089_v3, %s2029_s30  ;;  %1543 = vmatprep.subr.bf16.mxu0 %v289_v29 }
  0x94   : > { %v278_v30 = vpop.permute.xlu1 %277 }
  0x95   : > { %v288_v31 = vsel %vm287_vm1, %v278_v30, %v280_v24  ;;  %v286_v32 = vpop.permute.xlu0 %285 }
  0x96   : > { %883 = vrot.lane.b32.xlu1 %v2079_v0, %s2030_s4  ;;  %1544 = vmatpush1.bf16.msra.mxu0 %v288_v31  ;;  %v291_v33 = vsel %vm287_vm1, %v284_v27, %v286_v32  ;;  %vm1037_vm1 = vcmask 539648  }
  0x97   : > { %881 = vrot.lane.b32.xlu0 %v2082_v1, %s2030_s4  ;;  %1629 = vmatprep.subr.bf16.mxu1 %v291_v33 }
  0x98   : > { %v332_v35 = vpop.permute.xlu1 %331  ;;  %1630 = vmatpush1.bf16.msra.mxu1 %v290_v34 }
  0x99   : > { %v330_v37 = vpop.permute.xlu0 %329 }
  0x9a   : > { %877 = vrot.lane.b32.xlu1 %v2089_v3, %s2030_s4  ;;  %v339_v38 = vsel %vm337_vm2, %v330_v37, %v332_v35 }
  0x9b   : > { %885 = vrot.lane.b32.xlu0 %v1986_v36, %s2030_s4  ;;  %1545 = vmatprep.subr.bf16.mxu0 %v339_v38 }
  0x9c   : > { %v336_v39 = vpop.permute.xlu1 %335 }
  0x9d   : > { %v334_v40 = vpop.permute.xlu0 %333 }
  0x9e   : > { %931 = vrot.lane.b32.xlu1 %v2082_v1, %s2031_s5  ;;  %v341_v42 = vsel %vm337_vm2, %v334_v40, %v336_v39  ;;  %v340_v43 = vsel %vm337_vm2, %v332_v35, %v334_v40 }
  0x9f   : > { %929 = vrot.lane.b32.xlu0 %v2086_v2, %s2031_s5  ;;  %1631 = vmatprep.subr.bf16.mxu1 %v341_v42  ;;  %v1993_v42 = vld [vmem:[%s2076_s17 + $0x10] ss:$20 sps:$4 sm:$0xff]  }
  0xa0   : > { %v380_v44 = vpop.permute.xlu1 %379  ;;  %1632 = vmatpush1.bf16.msra.mxu1 %v340_v43 }
  0xa1   : > { %v328_v46 = vpop.permute.xlu0 %327 }
  0xa2   : > { %935 = vrot.lane.b32.xlu1 %v1987_v41, %s2031_s5  ;;  %v338_v47 = vsel %vm337_vm2, %v328_v46, %v330_v37  ;;  %v1992_v37 = vld [vmem:[%s2076_s17 + $0x10] ss:$20 sps:$4 sm:$0xff]   ;;  %vm1087_vm2 = vcmask 531456  }
  0xa3   : > { %933 = vrot.lane.b32.xlu0 %v2079_v0, %s2031_s5  ;;  %1546 = vmatpush1.bf16.msra.mxu0 %v338_v47 }
  0xa4   : > { %v384_v48 = vpop.permute.xlu1 %383 }
  0xa5   : > { %v382_v49 = vpop.permute.xlu0 %381 }
  0xa6   : > { %979 = vrot.lane.b32.xlu1 %v2086_v2, %s2032_s8  ;;  %v389_v50 = vsel %vm387_vm3, %v380_v44, %v382_v49  ;;  %v390_v55 = vsel %vm387_vm3, %v382_v49, %v384_v48 }
  0xa7   : > { %927 = vrot.lane.b32.xlu0 %v2089_v3, %s2031_s5  ;;  %1547 = vmatprep.subr.bf16.mxu0 %v389_v50  ;;  %s170_s5 = scalar_lea.vmem %s2274_s3, %s1914_s29 }
  0xa8   : > { %v378_v51 = vpop.permute.xlu1 %377 }
  0xa9   : > { %v388_v52 = vsel %vm387_vm3, %v378_v51, %v380_v44  ;;  %v386_v53 = vpop.permute.xlu0 %385 }
  0xaa   : > { %983 = vrot.lane.b32.xlu1 %v2079_v0, %s2032_s8  ;;  %1548 = vmatpush1.bf16.msra.mxu0 %v388_v52  ;;  %v391_v54 = vsel %vm387_vm3, %v384_v48, %v386_v53  ;;  %vm1137_vm3 = vcmask 523264  }
  0xab   : > { %981 = vrot.lane.b32.xlu0 %v2082_v1, %s2032_s8  ;;  %1633 = vmatprep.subr.bf16.mxu1 %v391_v54 }
  0xac   : > { %v432_v56 = vpop.permute.xlu1 %431  ;;  %1634 = vmatpush1.bf16.msra.mxu1 %v390_v55 }
  0xad   : > { %v430_v58 = vpop.permute.xlu0 %429 }
  0xae   : > { %977 = vrot.lane.b32.xlu1 %v2089_v3, %s2032_s8  ;;  %v439_v59 = vsel %vm437_vm4, %v430_v58, %v432_v56 }
  0xaf   : > { %985 = vrot.lane.b32.xlu0 %v1988_v57, %s2032_s8  ;;  %1549 = vmatprep.subr.bf16.mxu0 %v439_v59 }
  0xb0   : > { %v436_v60 = vpop.permute.xlu1 %435 }
  0xb1   : > { %v434_v61 = vpop.permute.xlu0 %433 }
  0xb2   : > { %1031 = vrot.lane.b32.xlu1 %v2082_v1, %s2033_s9  ;;  %v441_v63 = vsel %vm437_vm4, %v434_v61, %v436_v60  ;;  %v440_v4 = vsel %vm437_vm4, %v432_v56, %v434_v61  ;;  %v1997_v60 = vld [vmem:[%s2076_s17 + $0x4] ss:$20 sps:$4 sm:$0xff]  }
  0xb3   : > { %1029 = vrot.lane.b32.xlu0 %v2086_v2, %s2033_s9  ;;  %1635 = vmatprep.subr.bf16.mxu1 %v441_v63 }
  0xb4   : > { %v480_v5 = vpop.permute.xlu1 %479  ;;  %1636 = vmatpush1.bf16.msra.mxu1 %v440_v4  ;;  %v2000_v4 = vld [vmem:[%s2076_s17 + $0xc] ss:$20 sps:$4 sm:$0xff]  }
  0xb5   : > { %v428_v6 = vpop.permute.xlu0 %427 }
  0xb6   : > { %1035 = vrot.lane.b32.xlu1 %v1989_v62, %s2033_s9  ;;  %v438_v7 = vsel %vm437_vm4, %v428_v6, %v430_v58  ;;  %v1995_v58 = vld [vmem:[%s2076_s17 + $0x8] ss:$20 sps:$4 sm:$0xff]   ;;  %vm1187_vm4 = vcmask 392192  }
  0xb7   : > { %1033 = vrot.lane.b32.xlu0 %v2079_v0, %s2033_s9  ;;  %1550 = vmatpush1.bf16.msra.mxu0 %v438_v7 }
  0xb8   : > { %v484_v8 = vpop.permute.xlu1 %483 }
  0xb9   : > { %v482_v9 = vpop.permute.xlu0 %481 }
  0xba   : > { %1079 = vrot.lane.b32.xlu1 %v2086_v2, %s2034_s10  ;;  %v489_v10 = vsel %vm487_vm5, %v480_v5, %v482_v9  ;;  %v490_v15 = vsel %vm487_vm5, %v482_v9, %v484_v8 }
  0xbb   : > { %1027 = vrot.lane.b32.xlu0 %v2089_v3, %s2033_s9  ;;  %1551 = vmatprep.subr.bf16.mxu0 %v489_v10 }
  0xbc   : > { %v478_v11 = vpop.permute.xlu1 %477 }
  0xbd   : > { %v488_v12 = vsel %vm487_vm5, %v478_v11, %v480_v5  ;;  %v486_v13 = vpop.permute.xlu0 %485 }
  0xbe   : > { %1083 = vrot.lane.b32.xlu1 %v2079_v0, %s2034_s10  ;;  %1552 = vmatpush1.bf16.msra.mxu0 %v488_v12  ;;  %v491_v14 = vsel %vm487_vm5, %v484_v8, %v486_v13  ;;  %v2001_v8 = vld [vmem:[%s2076_s17] ss:$20 sps:$4 sm:$0xff]   ;;  %v2041_v13 = vmov 0   ;;  %vm1237_vm5 = vcmask 384000  }
  0xbf   : > { %1081 = vrot.lane.b32.xlu0 %v2082_v1, %s2034_s10  ;;  %1637 = vmatprep.subr.bf16.mxu1 %v491_v14 }
  0xc0   : > { %v532_v16 = vpop.permute.xlu1 %531  ;;  %1638 = vmatpush1.bf16.msra.mxu1 %v490_v15  ;;  %1965 = vset.pattern.permute.xlu0 %v2041_v13 }
  0xc1   : > { %v530_v18 = vpop.permute.xlu0 %529  ;;  %1966 = vset.pattern.permute.xlu1 %v2041_v13 }
  0xc2   : > { %1077 = vrot.lane.b32.xlu1 %v2089_v3, %s2034_s10  ;;  %v539_v19 = vsel %vm537_vm6, %v530_v18, %v532_v16 }
  0xc3   : > { %1085 = vrot.lane.b32.xlu0 %v1990_v17, %s2034_s10  ;;  %1553 = vmatprep.subr.bf16.mxu0 %v539_v19 }
  0xc4   : > { %v536_v20 = vpop.permute.xlu1 %535 }
  0xc5   : > { %v534_v21 = vpop.permute.xlu0 %533 }
  0xc6   : > { %1131 = vrot.lane.b32.xlu1 %v2082_v1, %s2035_s11  ;;  %v541_v23 = vsel %vm537_vm6, %v534_v21, %v536_v20  ;;  %v540_v24 = vsel %vm537_vm6, %v532_v16, %v534_v21  ;;  %v1505_v21 = vld [vmem:[%s2273_s2 + $0x8] sm:$0xff] }
  0xc7   : > { %1129 = vrot.lane.b32.xlu0 %v2086_v2, %s2035_s11  ;;  %1639 = vmatprep.subr.bf16.mxu1 %v541_v23  ;;  %v1504_v23 = vld [vmem:[%s2273_s2] sm:$0xff] }
  0xc8   : > { %v580_v25 = vpop.permute.xlu1 %579  ;;  %1640 = vmatpush1.bf16.msra.mxu1 %v540_v24 }
  0xc9   : > { %v528_v26 = vpop.permute.xlu0 %527 }
  0xca   : > { %1135 = vrot.lane.b32.xlu1 %v1991_v22, %s2035_s11  ;;  %v538_v27 = vsel %vm537_vm6, %v528_v26, %v530_v18  ;;  %v2002_v18 = vld [vmem:[%s2076_s17 + $0x10] ss:$20 sps:$4 sm:$0xff]   ;;  %vm1287_vm6 = vcmask 375808  }
  0xcb   : > { %1133 = vrot.lane.b32.xlu0 %v2079_v0, %s2035_s11  ;;  %1554 = vmatpush1.bf16.msra.mxu0 %v538_v27 }
  0xcc   : > { %v584_v28 = vpop.permute.xlu1 %583 }
  0xcd   : > { %v582_v29 = vpop.permute.xlu0 %581 }
  0xce   : > { %1179 = vrot.lane.b32.xlu1 %v2086_v2, %s2036_s14  ;;  %v589_v30 = vsel %vm587_vm7, %v580_v25, %v582_v29  ;;  %v590_v35 = vsel %vm587_vm7, %v582_v29, %v584_v28 }
  0xcf   : > { %1127 = vrot.lane.b32.xlu0 %v2089_v3, %s2035_s11  ;;  %1555 = vmatprep.subr.bf16.mxu0 %v589_v30 }
  0xd0   : > { %v578_v31 = vpop.permute.xlu1 %577 }
  0xd1   : > { %v588_v32 = vsel %vm587_vm7, %v578_v31, %v580_v25  ;;  %v586_v33 = vpop.permute.xlu0 %585 }
  0xd2   : > { %1183 = vrot.lane.b32.xlu1 %v2079_v0, %s2036_s14  ;;  %1556 = vmatpush1.bf16.msra.mxu0 %v588_v32  ;;  %v591_v34 = vsel %vm587_vm7, %v584_v28, %v586_v33  ;;  %vm1337_vm7 = vcmask 367616  }
  0xd3   : > { %1181 = vrot.lane.b32.xlu0 %v2082_v1, %s2036_s14  ;;  %1641 = vmatprep.subr.bf16.mxu1 %v591_v34 }
  0xd4   : > { %v632_v36 = vpop.permute.xlu1 %631  ;;  %1642 = vmatpush1.bf16.msra.mxu1 %v590_v35 }
  0xd5   : > { %v630_v38 = vpop.permute.xlu0 %629 }
  0xd6   : > { %1177 = vrot.lane.b32.xlu1 %v2089_v3, %s2036_s14  ;;  %v639_v39 = vsel %vm637_vm8, %v630_v38, %v632_v36 }
  0xd7   : > { %1185 = vrot.lane.b32.xlu0 %v1992_v37, %s2036_s14  ;;  %1557 = vmatprep.subr.bf16.mxu0 %v639_v39 }
  0xd8   : > { %v636_v40 = vpop.permute.xlu1 %635 }
  0xd9   : > { %v634_v41 = vpop.permute.xlu0 %633 }
  0xda   : > { %1231 = vrot.lane.b32.xlu1 %v2082_v1, %s2037_s15  ;;  %v641_v43 = vsel %vm637_vm8, %v634_v41, %v636_v40  ;;  %v640_v44 = vsel %vm637_vm8, %v632_v36, %v634_v41 }
  0xdb   : > { %1229 = vrot.lane.b32.xlu0 %v2086_v2, %s2037_s15  ;;  %1643 = vmatprep.subr.bf16.mxu1 %v641_v43 }
  0xdc   : > { %v680_v45 = vpop.permute.xlu1 %679  ;;  %1644 = vmatpush1.bf16.msra.mxu1 %v640_v44 }
  0xdd   : > { %v628_v46 = vpop.permute.xlu0 %627 }
  0xde   : > { %1235 = vrot.lane.b32.xlu1 %v1993_v42, %s2037_s15  ;;  %v638_v47 = vsel %vm637_vm8, %v628_v46, %v630_v38  ;;  %v2003_v46 = vld [vmem:[%s2272_s1] ss:$16 sps:$4 sm:$0xff]   ;;  %vm1387_vm8 = vcmask 359424  }
  0xdf   : > { %1233 = vrot.lane.b32.xlu0 %v2079_v0, %s2037_s15  ;;  %1558 = vmatpush1.bf16.msra.mxu0 %v638_v47  ;;  %v2006_v47 = vld [vmem:[%s2272_s1 + $0xc] ss:$16 sps:$4 sm:$0xff]  }
  0xe0   : > { %v684_v48 = vpop.permute.xlu1 %683 }
  0xe1   : > { %v682_v49 = vpop.permute.xlu0 %681 }
  0xe2   : > { %1279 = vrot.lane.b32.xlu1 %v2086_v2, %s2038_s16  ;;  %v689_v50 = vsel %vm687_vm9, %v680_v45, %v682_v49  ;;  %v690_v55 = vsel %vm687_vm9, %v682_v49, %v684_v48  ;;  %v1994_v2 = vld [vmem:[%s2076_s17 + $0x10] ss:$20 sps:$4 sm:$0xff]  }
  0xe3   : > { %1227 = vrot.lane.b32.xlu0 %v2089_v3, %s2037_s15  ;;  %1559 = vmatprep.subr.bf16.mxu0 %v689_v50 }
  0xe4   : > { %v678_v51 = vpop.permute.xlu1 %677 }
  0xe5   : > { %v688_v52 = vsel %vm687_vm9, %v678_v51, %v680_v45  ;;  %v686_v53 = vpop.permute.xlu0 %685 }
  0xe6   : > { %1283 = vrot.lane.b32.xlu1 %v2079_v0, %s2038_s16  ;;  %1560 = vmatpush1.bf16.msra.mxu0 %v688_v52  ;;  %v691_v54 = vsel %vm687_vm9, %v684_v48, %v686_v53 }
  0xe7   : > { %1281 = vrot.lane.b32.xlu0 %v2082_v1, %s2038_s16  ;;  %1645 = vmatprep.subr.bf16.mxu1 %v691_v54  ;;  %v1999_v1 = vld [vmem:[%s2076_s17 + $0x10] ss:$20 sps:$4 sm:$0xff]  }
  0xe8   : > { %v732_v56 = vpop.permute.xlu1 %731  ;;  %1646 = vmatpush1.bf16.msra.mxu1 %v690_v55 }
  0xe9   : > { %v730_v57 = vpop.permute.xlu0 %729 }
  0xea   : > { %1277 = vrot.lane.b32.xlu1 %v2089_v3, %s2038_s16  ;;  %v739_v59 = vsel %vm737_vm10, %v730_v57, %v732_v56 }
  0xeb   : > { %1285 = vrot.lane.b32.xlu0 %v1994_v2, %s2038_s16  ;;  %1561 = vmatprep.subr.bf16.mxu0 %v739_v59 }
  0xec   : > { %v736_v0 = vpop.permute.xlu1 %735 }
  0xed   : > { %v734_v61 = vpop.permute.xlu0 %733 }
  0xee   : > { %1331 = vrot.lane.b32.xlu1 %v1995_v58, %s2039_s18  ;;  %v741_v62 = vsel %vm737_vm10, %v734_v61, %v736_v0  ;;  %v740_v63 = vsel %vm737_vm10, %v732_v56, %v734_v61 }
  0xef   : > { %1329 = vrot.lane.b32.xlu0 %v1997_v60, %s2039_s18  ;;  %1647 = vmatprep.subr.bf16.mxu1 %v741_v62 }
  0xf0   : > { %v780_v3 = vpop.permute.xlu1 %779  ;;  %1648 = vmatpush1.bf16.msra.mxu1 %v740_v63 }
  0xf1   : > { %v728_v5 = vpop.permute.xlu0 %727 }
  0xf2   : > { %1335 = vrot.lane.b32.xlu1 %v1999_v1, %s2039_s18  ;;  %v738_v6 = vsel %vm737_vm10, %v728_v5, %v730_v57 }
  0xf3   : > { %1333 = vrot.lane.b32.xlu0 %v2000_v4, %s2039_s18  ;;  %1562 = vmatpush1.bf16.msra.mxu0 %v738_v6 }
  0xf4   : > { %v784_v7 = vpop.permute.xlu1 %783 }
  0xf5   : > { %v782_v9 = vpop.permute.xlu0 %781 }
  0xf6   : > { %1379 = vrot.lane.b32.xlu1 %v1997_v60, %s2040_s19  ;;  %v789_v10 = vsel %vm787_vm11, %v780_v3, %v782_v9  ;;  %v790_v16 = vsel %vm787_vm11, %v782_v9, %v784_v7 }
  0xf7   : > { %1327 = vrot.lane.b32.xlu0 %v2001_v8, %s2039_s18  ;;  %1563 = vmatprep.subr.bf16.mxu0 %v789_v10 }
  0xf8   : > { %v778_v11 = vpop.permute.xlu1 %777 }
  0xf9   : > { %v788_v12 = vsel %vm787_vm11, %v778_v11, %v780_v3  ;;  %v786_v14 = vpop.permute.xlu0 %785 }
  0xfa   : > { %1383 = vrot.lane.b32.xlu1 %v2000_v4, %s2040_s19  ;;  %1564 = vmatpush1.bf16.msra.mxu0 %v788_v12  ;;  %v791_v15 = vsel %vm787_vm11, %v784_v7, %v786_v14 }
  0xfb   : > { %1381 = vrot.lane.b32.xlu0 %v1995_v58, %s2040_s19  ;;  %1649 = vmatprep.subr.bf16.mxu1 %v791_v15 }
  0xfc   : > { %v832_v17 = vpop.permute.xlu1 %831  ;;  %1650 = vmatpush1.bf16.msra.mxu1 %v790_v16 }
  0xfd   : > { %v830_v19 = vpop.permute.xlu0 %829 }
  0xfe   : > { %1377 = vrot.lane.b32.xlu1 %v2001_v8, %s2040_s19  ;;  %v839_v20 = vsel %vm837_vm12, %v830_v19, %v832_v17 }
  0xff   : > { %1385 = vrot.lane.b32.xlu0 %v2002_v18, %s2040_s19  ;;  %1565 = vmatprep.subr.bf16.mxu0 %v839_v20 }
 0x100   : > { %v836_v22 = vpop.permute.xlu1 %835 }
 0x101   : > { %v834_v24 = vpop.permute.xlu0 %833 }
 0x102   : > { %1513 = vperm.xlu1 %1966, %v1505_v21   ;;  %v841_v25 = vsel %vm837_vm12, %v834_v24, %v836_v22  ;;  %v840_v26 = vsel %vm837_vm12, %v832_v17, %v834_v24 }
 0x103   : > { %1651 = vmatprep.subr.bf16.mxu1 %v841_v25  ;;  %1508 = vperm.xlu0 %1965, %v1504_v23  }
 0x104   : > { %v880_v27 = vpop.permute.xlu1 %879  ;;  %1652 = vmatpush1.bf16.msra.mxu1 %v840_v26 }
 0x105   : > { %v828_v28 = vpop.permute.xlu0 %827 }
 0x106   : > { %v838_v29 = vsel %vm837_vm12, %v828_v28, %v830_v19 }
 0x107   : > { %1566 = vmatpush1.bf16.msra.mxu0 %v838_v29 }
 0x108   : > { %v884_v30 = vpop.permute.xlu1 %883 }
 0x109   : > { %v882_v31 = vpop.permute.xlu0 %881 }
 0x10a   : > { %v889_v32 = vsel %vm887_vm13, %v880_v27, %v882_v31  ;;  %v890_v37 = vsel %vm887_vm13, %v882_v31, %v884_v30 }
 0x10b   : > { %1567 = vmatprep.subr.bf16.mxu0 %v889_v32 }
 0x10c   : > { %v878_v33 = vpop.permute.xlu1 %877 }
 0x10d   : > { %v888_v34 = vsel %vm887_vm13, %v878_v33, %v880_v27  ;;  %v886_v35 = vpop.permute.xlu0 %885 }
 0x10e   : > { %1568 = vmatpush1.bf16.msra.mxu0 %v888_v34  ;;  %v891_v36 = vsel %vm887_vm13, %v884_v30, %v886_v35 }
 0x10f   : > { %1653 = vmatprep.subr.bf16.mxu1 %v891_v36 }
 0x110   : > { %v932_v38 = vpop.permute.xlu1 %931  ;;  %1654 = vmatpush1.bf16.msra.mxu1 %v890_v37 }
 0x111   : > { %v930_v39 = vpop.permute.xlu0 %929 }
 0x112   : > { %v939_v40 = vsel %vm937_vm14, %v930_v39, %v932_v38 }
 0x113   : > { %1569 = vmatprep.subr.bf16.mxu0 %v939_v40 }
 0x114   : > { %v936_v41 = vpop.permute.xlu1 %935 }
 0x115   : > { %v934_v42 = vpop.permute.xlu0 %933 }
 0x116   : > { %v941_v43 = vsel %vm937_vm14, %v934_v42, %v936_v41  ;;  %v940_v44 = vsel %vm937_vm14, %v932_v38, %v934_v42 }
 0x117   : > { %1655 = vmatprep.subr.bf16.mxu1 %v941_v43 }
 0x118   : > { %v980_v45 = vpop.permute.xlu1 %979  ;;  %1656 = vmatpush1.bf16.msra.mxu1 %v940_v44 }
 0x119   : > { %v928_v48 = vpop.permute.xlu0 %927 }
 0x11a   : > { %v938_v49 = vsel %vm937_vm14, %v928_v48, %v930_v39 }
 0x11b   : > { %1570 = vmatpush1.bf16.msra.mxu0 %v938_v49  ;;  %1658 = vmatmul.mubr.bf16.vlgmr.msra.gmra.mrb[0].mxu1 %v2003_v46 }
 0x11c   : > { %v984_v50 = vpop.permute.xlu1 %983  ;;  %1911 = vmatprep.mubr.msk.bf16.mxu1 %vm1535_vm15, %v2006_v47 }
 0x11d   : > { %v982_v51 = vpop.permute.xlu0 %981 }
 0x11e   : > { %v989_v52 = vsel %vm987_vm0, %v980_v45, %v982_v51  ;;  %1572 = vmatmul.mubr.bf16.vlgmr.msra.gmra.mrb[0].mxu0 %v2003_v46  ;;  %v990_v2 = vsel %vm987_vm0, %v982_v51, %v984_v50 }
 0x11f   : > { %1582 = vmatprep.subr.bf16.mxu0 %v989_v52  ;;  %1910 = vmatprep.mubr.msk.bf16.mxu0 %vm1535_vm15, %v2006_v47 }
 0x120   : > { %v978_v53 = vpop.permute.xlu1 %977 }
 0x121   : > { %v988_v54 = vsel %vm987_vm0, %v978_v53, %v980_v45  ;;  %v986_v55 = vpop.permute.xlu0 %985 }
 0x122   : > { %1583 = vmatpush1.bf16.msra.mxu0 %v988_v54  ;;  %v991_v56 = vsel %vm987_vm0, %v984_v50, %v986_v55 }
 0x123   : > { %1668 = vmatprep.subr.bf16.mxu1 %v991_v56 }
 0x124   : > { %v1032_v57 = vpop.permute.xlu1 %1031  ;;  %1669 = vmatpush1.bf16.msra.mxu1 %v990_v2 }
 0x125   : > { %v1030_v58 = vpop.permute.xlu0 %1029 }
 0x126   : > { %v1039_v59 = vsel %vm1037_vm1, %v1030_v58, %v1032_v57 }
 0x127   : > { %1584 = vmatprep.subr.bf16.mxu0 %v1039_v59 }
 0x128   : > { %v1036_v0 = vpop.permute.xlu1 %1035 }
 0x129   : > { %v1034_v60 = vpop.permute.xlu0 %1033 }
 0x12a   : > { %v1040_v61 = vsel %vm1037_vm1, %v1032_v57, %v1034_v60  ;;  %v1041_v1 = vsel %vm1037_vm1, %v1034_v60, %v1036_v0 }
 0x12b   : > { %1670 = vmatprep.subr.bf16.mxu1 %v1041_v1 }
 0x12c   : > { %v1080_v62 = vpop.permute.xlu1 %1079  ;;  %1671 = vmatpush1.bf16.msra.mxu1 %v1040_v61  ;;  %v2008_v61 = vld [vmem:[%s2272_s1 + $0x8] ss:$16 sps:$4 sm:$0xff]  }
 0x12d   : > { %v1028_v63 = vpop.permute.xlu0 %1027 }
 0x12e   : > { %v1038_v3 = vsel %vm1037_vm1, %v1028_v63, %v1030_v58 }
 0x12f   : > { %1585 = vmatpush1.bf16.msra.mxu0 %v1038_v3 }
 0x130   : > { %v1084_v4 = vpop.permute.xlu1 %1083 }
 0x131   : > { %v1082_v5 = vpop.permute.xlu0 %1081 }
 0x132   : > { %v1089_v6 = vsel %vm1087_vm2, %v1080_v62, %v1082_v5  ;;  %v1090_v11 = vsel %vm1087_vm2, %v1082_v5, %v1084_v4 }
 0x133   : > { %1586 = vmatprep.subr.bf16.mxu0 %v1089_v6 }
 0x134   : > { %v1078_v7 = vpop.permute.xlu1 %1077 }
 0x135   : > { %v1088_v8 = vsel %vm1087_vm2, %v1078_v7, %v1080_v62  ;;  %v1086_v9 = vpop.permute.xlu0 %1085 }
 0x136   : > { %1587 = vmatpush1.bf16.msra.mxu0 %v1088_v8  ;;  %v1091_v10 = vsel %vm1087_vm2, %v1084_v4, %v1086_v9 }
 0x137   : > { %1672 = vmatprep.subr.bf16.mxu1 %v1091_v10 }
 0x138   : > { %v1132_v12 = vpop.permute.xlu1 %1131  ;;  %1673 = vmatpush1.bf16.msra.mxu1 %v1090_v11 }
 0x139   : > { %v1130_v13 = vpop.permute.xlu0 %1129 }
 0x13a   : > { %v1139_v14 = vsel %vm1137_vm3, %v1130_v13, %v1132_v12 }
 0x13b   : > { %1588 = vmatprep.subr.bf16.mxu0 %v1139_v14 }
 0x13c   : > { %v1136_v15 = vpop.permute.xlu1 %1135 }
 0x13d   : > { %v1134_v16 = vpop.permute.xlu0 %1133 }
 0x13e   : > { %v1140_v17 = vsel %vm1137_vm3, %v1132_v12, %v1134_v16  ;;  %v1141_v18 = vsel %vm1137_vm3, %v1134_v16, %v1136_v15 }
 0x13f   : > { %1674 = vmatprep.subr.bf16.mxu1 %v1141_v18 }
 0x140   : > { %v1180_v19 = vpop.permute.xlu1 %1179  ;;  %1675 = vmatpush1.bf16.msra.mxu1 %v1140_v17 }
 0x141   : > { %v1128_v20 = vpop.permute.xlu0 %1127 }
 0x142   : > { %v1138_v21 = vsel %vm1137_vm3, %v1128_v20, %v1130_v13 }
 0x143   : > { %1589 = vmatpush1.bf16.msra.mxu0 %v1138_v21 }
 0x144   : > { %v1184_v22 = vpop.permute.xlu1 %1183 }
 0x145   : > { %v1182_v23 = vpop.permute.xlu0 %1181 }
 0x146   : > { %v1189_v24 = vsel %vm1187_vm4, %v1180_v19, %v1182_v23  ;;  %v1190_v29 = vsel %vm1187_vm4, %v1182_v23, %v1184_v22 }
 0x147   : > { %1590 = vmatprep.subr.bf16.mxu0 %v1189_v24 }
 0x148   : > { %v1178_v25 = vpop.permute.xlu1 %1177 }
 0x149   : > { %v1188_v26 = vsel %vm1187_vm4, %v1178_v25, %v1180_v19  ;;  %v1186_v27 = vpop.permute.xlu0 %1185 }
 0x14a   : > { %1591 = vmatpush1.bf16.msra.mxu0 %v1188_v26  ;;  %v1191_v28 = vsel %vm1187_vm4, %v1184_v22, %v1186_v27 }
 0x14b   : > { %1676 = vmatprep.subr.bf16.mxu1 %v1191_v28 }
 0x14c   : > { %v1232_v30 = vpop.permute.xlu1 %1231  ;;  %1677 = vmatpush1.bf16.msra.mxu1 %v1190_v29 }
 0x14d   : > { %v1230_v31 = vpop.permute.xlu0 %1229 }
 0x14e   : > { %v1239_v32 = vsel %vm1237_vm5, %v1230_v31, %v1232_v30 }
 0x14f   : > { %1592 = vmatprep.subr.bf16.mxu0 %v1239_v32 }
 0x150   : > { %v1236_v33 = vpop.permute.xlu1 %1235 }
 0x151   : > { %v1234_v34 = vpop.permute.xlu0 %1233 }
 0x152   : > { %v1240_v35 = vsel %vm1237_vm5, %v1232_v30, %v1234_v34  ;;  %v1241_v36 = vsel %vm1237_vm5, %v1234_v34, %v1236_v33 }
 0x153   : > { %1678 = vmatprep.subr.bf16.mxu1 %v1241_v36 }
 0x154   : > { %v1280_v37 = vpop.permute.xlu1 %1279  ;;  %1679 = vmatpush1.bf16.msra.mxu1 %v1240_v35 }
 0x155   : > { %v1228_v38 = vpop.permute.xlu0 %1227 }
 0x156   : > { %v1238_v39 = vsel %vm1237_vm5, %v1228_v38, %v1230_v31 }
 0x157   : > { %1593 = vmatpush1.bf16.msra.mxu0 %v1238_v39 }
 0x158   : > { %v1284_v40 = vpop.permute.xlu1 %1283 }
 0x159   : > { %v1282_v41 = vpop.permute.xlu0 %1281 }
 0x15a   : > { %v1289_v42 = vsel %vm1287_vm6, %v1280_v37, %v1282_v41  ;;  %v1290_v47 = vsel %vm1287_vm6, %v1282_v41, %v1284_v40 }
 0x15b   : > { %1594 = vmatprep.subr.bf16.mxu0 %v1289_v42 }
 0x15c   : > { %v1278_v43 = vpop.permute.xlu1 %1277 }
 0x15d   : > { %v1288_v44 = vsel %vm1287_vm6, %v1278_v43, %v1280_v37  ;;  %v1286_v45 = vpop.permute.xlu0 %1285 }
 0x15e   : > { %1595 = vmatpush1.bf16.msra.mxu0 %v1288_v44  ;;  %v1291_v46 = vsel %vm1287_vm6, %v1284_v40, %v1286_v45 }
 0x15f   : > { %1680 = vmatprep.subr.bf16.mxu1 %v1291_v46 }
 0x160   : > { %v1332_v48 = vpop.permute.xlu1 %1331  ;;  %1681 = vmatpush1.bf16.msra.mxu1 %v1290_v47 }
 0x161   : > { %v1330_v49 = vpop.permute.xlu0 %1329 }
 0x162   : > { %v1339_v50 = vsel %vm1337_vm7, %v1330_v49, %v1332_v48 }
 0x163   : > { %1596 = vmatprep.subr.bf16.mxu0 %v1339_v50 }
 0x164   : > { %v1336_v51 = vpop.permute.xlu1 %1335 }
 0x165   : > { %v1334_v52 = vpop.permute.xlu0 %1333 }
 0x166   : > { %v1340_v53 = vsel %vm1337_vm7, %v1332_v48, %v1334_v52  ;;  %v1341_v54 = vsel %vm1337_vm7, %v1334_v52, %v1336_v51 }
 0x167   : > { %1682 = vmatprep.subr.bf16.mxu1 %v1341_v54 }
 0x168   : > { %v1380_v55 = vpop.permute.xlu1 %1379  ;;  %1683 = vmatpush1.bf16.msra.mxu1 %v1340_v53 }
 0x169   : > { %v1328_v56 = vpop.permute.xlu0 %1327 }
 0x16a   : > { %v1338_v2 = vsel %vm1337_vm7, %v1328_v56, %v1330_v49 }
 0x16b   : > { %1597 = vmatpush1.bf16.msra.mxu0 %v1338_v2 }
 0x16c   : > { %v1384_v57 = vpop.permute.xlu1 %1383 }
 0x16d   : > { %v1382_v58 = vpop.permute.xlu0 %1381 }
 0x16e   : > { %v1389_v59 = vsel %vm1387_vm8, %v1380_v55, %v1382_v58  ;;  %v1390_v63 = vsel %vm1387_vm8, %v1382_v58, %v1384_v57 }
 0x16f   : > { %1598 = vmatprep.subr.bf16.mxu0 %v1389_v59 }
 0x170   : > { %v1378_v0 = vpop.permute.xlu1 %1377 }
 0x171   : > { %v1388_v60 = vsel %vm1387_vm8, %v1378_v0, %v1380_v55  ;;  %v1386_v1 = vpop.permute.xlu0 %1385 }
 0x172   : > { %1599 = vmatpush1.bf16.msra.mxu0 %v1388_v60  ;;  %v1391_v62 = vsel %vm1387_vm8, %v1384_v57, %v1386_v1 }
 0x173   : > { %1684 = vmatprep.subr.bf16.mxu1 %v1391_v62 }
 0x174   : > { %1685 = vmatpush1.bf16.msra.mxu1 %v1390_v63 }
 0x175   : > { %1615 = vmatmul.mubr.bf16.vlgmr.msra.gmra.mrb[0].mxu0 %v2008_v61 }
 0x177   : > { %1701 = vmatmul.mubr.bf16.vlgmr.msra.gmra.mrb[0].mxu1 %v2008_v61 }
 0x181   : > { %v1514_v5 = vpop.permute.xlu1 %1513 }
 0x182   : > { %v1509_v3 = vpop.permute.xlu0 %1508 }
 0x248   : > { %v1616_v4 = vpop.f32.mrb[0].mxu0 }
 0x249   : > { %v1915_v6 = vadd.f32 %v1616_v4, %v1509_v3  ;;  %v1618_v7 = vpop.f32.mrb[1].mxu0 }
 0x24a   : > { %v1916_v8 = vadd.f32 %v1618_v7, %v1509_v3  ;;  %v1620_v9 = vpop.f32.mrb[2].mxu0  ;;  %v1702_v10 = vpop.f32.mrb[0].mxu1 }
 0x24b   : > { %1711 = vst [vmem:[%s170_s5] sm:$0xff] %v1915_v6  ;;  %v1917_v11 = vadd.f32 %v1620_v9, %v1514_v5  ;;  %v1622_v12 = vpop.f32.mrb[3].mxu0  ;;  %v1919_v13 = vadd.f32 %v1702_v10, %v1509_v3  ;;  %v1704_v14 = vpop.f32.mrb[1].mxu1 }
 0x24c   : > { %1712 = vst [vmem:[%s170_s5 + $0x8] sm:$0xff] %v1916_v8  ;;  %v1918_v15 = vadd.f32 %v1622_v12, %v1514_v5  ;;  %v1920_v16 = vadd.f32 %v1704_v14, %v1509_v3  ;;  %v1706_v17 = vpop.f32.mrb[2].mxu1 }
 0x24d   : > { %1715 = vst [vmem:[%s170_s5 + $0x20] sm:$0xff] %v1917_v11  ;;  %1713 = vst [vmem:[%s170_s5 + $0x10] sm:$0xff] %v1919_v13  ;;  %v1921_v18 = vadd.f32 %v1706_v17, %v1514_v5  ;;  %v1708_v19 = vpop.f32.mrb[3].mxu1 }
 0x24e   : > { %1716 = vst [vmem:[%s170_s5 + $0x28] sm:$0xff] %v1918_v15  ;;  %1714 = vst [vmem:[%s170_s5 + $0x18] sm:$0xff] %v1920_v16  ;;  %v1922_v20 = vadd.f32 %v1708_v19, %v1514_v5 }
 0x24f   : > { %1717 = vst [vmem:[%s170_s5 + $0x30] sm:$0xff] %v1921_v18 }
 0x250   : > { %1718 = vst [vmem:[%s170_s5 + $0x38] sm:$0xff] %v1922_v20 }
 0x251 PF: > { %s13_s12 = sadd.s32 1, %s2015_s12  }
 0x252   : > { %p10_p4 = scmp.ge.s32.totalorder %s13_s12, 4  }
 0x254   :  { %12 = sbr.rel (!%p10_p4) target bundleno = 1 (0x1), region = 62 }

</bundles_post_ra>
